<compile_context>
chip_gen: v5e
topology: v5e:2x2
jax: 0.10.0
libtpu: 0.0.40
codegen_flags: <defaults>
</compile_context>

<pallas_src>
import functools

import jax
import jax.numpy as jnp
from jax.experimental import pallas as pl
from jax.experimental.pallas import tpu as pltpu


def flow_block_kernel(x_ref, w1_ref, w2_ref, out_ref, inter_ref, *, wp):
    """One grid step = a block of `k` whole padded images.

    x_ref:     (k, Cin, L)    L = (H+2)*(W+2), lane axis = flattened padded spatial
    w1_ref:    (Cmid, 9*Cin)  conv1 weights, columns ordered (di, dj, ci)
    w2_ref:    (Cmid, Cmid)   conv2 (1x1) weights
    out_ref:   (k, Cin, L)    tanh(x + cat(inter, 0)) in the padded layout
    inter_ref: (k, Cmid, L)   conv2 output in the padded layout
    wp:        W + 2          padded row stride along the lane axis
    """
    k, cin, l = x_ref.shape
    cmid = inter_ref.shape[1]
    halo = wp + 1

    w1 = w1_ref[...]
    w2 = w2_ref[...]
    zhalo = jnp.zeros((cin, halo), x_ref.dtype)   # hoisted out of the image loop

    for j in range(k):                            # small static unroll over images
        x = x_ref[j]                              # (Cin, L) fp32

        # Halo'd copy: every 3x3 tap becomes a static lane slice.  Reads that fall
        # outside [0, L) land in the zero halo; reads that cross rows land in the
        # image's own zero-padding rows/columns -- all such positions are padding
        # and are discarded by the wrapper, so interior results are exact.
        xext = jnp.concatenate([zhalo, x, zhalo], axis=1)        # (Cin, L + 2*halo)
        taps = [xext[:, halo + (di - 1) * wp + (dj - 1):
                        halo + (di - 1) * wp + (dj - 1) + l]
                for di in range(3) for dj in range(3)]           # 9 x (Cin, L)
        patches = jnp.concatenate(taps, axis=0)                  # (9*Cin, L), VMEM only

        # conv1: 3x3 / pad 1 / no bias as a single K=9*Cin matmul, then ReLU.
        acc = jnp.dot(w1, patches, preferred_element_type=jnp.float32)   # (Cmid, L)
        inter = jnp.maximum(acc, 0.0)
        # conv2: 1x1 / no bias.
        inter2 = jnp.dot(w2, inter, preferred_element_type=jnp.float32)  # (Cmid, L)
        inter_ref[j, :, :] = inter2.astype(inter_ref.dtype)

        # out = tanh(x + cat([inter2, zeros], channel)).  The residual x is the
        # centre tap, i.e. the input block itself -- no extra input stream.
        out_ref[j, :cmid, :] = jnp.tanh(x[:cmid, :] + inter2).astype(out_ref.dtype)
        if cin > cmid:   # static (shape-level) branch: zero-padded channels
            out_ref[j, cmid:, :] = jnp.tanh(x[cmid:, :]).astype(out_ref.dtype)


def _images_per_block(n_images, lanes_per_image, target_lanes=8192):
    """Images per grid step: the largest divisor of N that (a) keeps the block
    around `target_lanes` lanes (~3-4 MiB of VMEM working set at Cin=4, far
    below the 32 MiB scoped limit and safe on v7x's 64 MiB physical VMEM) and
    (b) leaves >= 2 grid steps when N >= 2 so both v7x TensorCores get work."""
    cap = max(1, target_lanes // max(1, lanes_per_image))
    if n_images >= 2:
        cap = min(cap, max(1, n_images // 2))
    best = 1
    for d in range(1, min(cap, n_images) + 1):
        if n_images % d == 0:
            best = d
    return best


@jax.jit
def flow_block_forward(x_nchw, w1_oihw, w2_oihw):
    """x_nchw: [N, Cin, H, W]; w1_oihw: [Cmid, Cin, 3, 3]; w2_oihw: [Cmid, Cmid, 1, 1]."""
    N, Cin, H, W = x_nchw.shape
    Cmid = w1_oihw.shape[0]
    assert Cin >= Cmid, "FlowBlock requires in_planes >= planes"
    Hp, Wp = H + 2, W + 2
    L = Hp * Wp   # flattened padded spatial length per image (lane axis)
    # TODO(synk): a single image too large for one VMEM block would need
    # within-image lane tiling with a manual halo DMA; not needed at these sizes.

    k = _images_per_block(N, L)
    grid = (N // k,)

    # Layout prep: zero-pad spatially and flatten (H+2, W+2) onto the lane axis.
    # This is the only extra HBM pass on the input (~1.3x |x|); no transposes.
    xflat = jnp.pad(x_nchw, ((0, 0), (0, 0), (1, 1), (1, 1))).reshape(N, Cin, L)

    # Weight layout: columns ordered (di, dj, ci) to match the in-kernel tap order.
    w1 = jnp.transpose(w1_oihw, (0, 2, 3, 1)).reshape(Cmid, 9 * Cin)
    w2 = w2_oihw[:, :, 0, 0]

    kernel = functools.partial(flow_block_kernel, wp=Wp)

    out_flat, inter_flat = pl.pallas_call(
        kernel,
        out_shape=(
            jax.ShapeDtypeStruct((N, Cin, L), x_nchw.dtype),
            jax.ShapeDtypeStruct((N, Cmid, L), x_nchw.dtype),
        ),
        grid=grid,
        in_specs=[
            pl.BlockSpec((k, Cin, L), lambda i: (i, 0, 0)),     # padded images
            pl.BlockSpec((Cmid, 9 * Cin), lambda i: (0, 0)),    # w1, resident
            pl.BlockSpec((Cmid, Cmid), lambda i: (0, 0)),       # w2, resident
        ],
        out_specs=(
            pl.BlockSpec((k, Cin, L), lambda i: (i, 0, 0)),
            pl.BlockSpec((k, Cmid, L), lambda i: (i, 0, 0)),
        ),
        compiler_params=pltpu.CompilerParams(
            dimension_semantics=("parallel",),
            vmem_limit_bytes=32 * 1024 * 1024),
    )(xflat, w1, w2)

    # De-pad: slice the interior.  Outputs are already NCHW-ordered -> no transpose.
    out = out_flat.reshape(N, Cin, Hp, Wp)[:, :, 1:-1, 1:-1]
    inter = inter_flat.reshape(N, Cmid, Hp, Wp)[:, :, 1:-1, 1:-1]
    return out, inter


def _reference(x_nchw, w1_oihw, w2_oihw):
    """Pure-JAX reference (mirrors the PyTorch forward)."""
    dn = jax.lax.conv_dimension_numbers(x_nchw.shape, w1_oihw.shape,
                                        ("NCHW", "OIHW", "NCHW"))
    inter = jax.lax.conv_general_dilated(
        x_nchw, w1_oihw, (1, 1), ((1, 1), (1, 1)), dimension_numbers=dn,
        precision=jax.lax.Precision.HIGHEST)
    inter = jnp.maximum(inter, 0.0)
    inter = jax.lax.conv_general_dilated(
        inter, w2_oihw, (1, 1), ((0, 0), (0, 0)), dimension_numbers=dn,
        precision=jax.lax.Precision.HIGHEST)
    out_planes = x_nchw.shape[1] - inter.shape[1]
    zeros = jnp.zeros_like(x_nchw[:, :out_planes])
    out = jnp.tanh(x_nchw + jnp.concatenate([inter, zeros], axis=1))
    return out, inter


if __name__ == "__main__":
    # small shapes consistent with the module: in_planes=4, planes=2, 16x16
    N, in_planes, planes, H, W = 2, 4, 2, 16, 16

    key = jax.random.PRNGKey(0)
    kx, k1, k2 = jax.random.split(key, 3)
    x = jax.random.normal(kx, (N, in_planes, H, W), dtype=jnp.float32)
    # deterministic synthetic weights (PyTorch OIHW shapes)
    w1 = 0.1 * jax.random.normal(k1, (planes, in_planes, 3, 3), dtype=jnp.float32)
    w2 = 0.1 * jax.random.normal(k2, (planes, planes, 1, 1), dtype=jnp.float32)

    out, inter = flow_block_forward(x, w1, w2)
    out = jax.block_until_ready(out)
    inter = jax.block_until_ready(inter)

    out_ref, inter_ref = _reference(x, w1, w2)
    assert out.shape == (N, in_planes, H, W) and inter.shape == (N, planes, H, W)
    assert jnp.allclose(out, out_ref, atol=1e-4, rtol=1e-4)
    assert jnp.allclose(inter, inter_ref, atol=1e-4, rtol=1e-4)

    print("KERNEL_OK")
</pallas_src>

<mosaic_0001>
module attributes {stable_mosaic.version = 11 : i64} {
  func.func @flow_block_kernel(%arg0: i32, %arg1: memref<1x4x324xf32, #tpu.memory_space<vmem>>, %arg2: memref<2x36xf32, #tpu.memory_space<vmem>>, %arg3: memref<2x2xf32, #tpu.memory_space<vmem>>, %arg4: memref<1x4x324xf32, #tpu.memory_space<vmem>>, %arg5: memref<1x2x324xf32, #tpu.memory_space<vmem>>) attributes {dimension_semantics = [#tpu.dimension_semantics<parallel>], iteration_bounds = array<i64: 2>, scalar_prefetch = 0 : i64, scratch_operands = 0 : i64, tpu.core_type = #tpu.core_type<tc>, window_params = [{transform_indices = @transform_0, window_bounds = array<i64: 1, 4, 324>}, {pipeline_mode = #tpu.pipeline_mode<synchronous>, transform_indices = @transform_1, window_bounds = array<i64: 2, 36>}, {pipeline_mode = #tpu.pipeline_mode<synchronous>, transform_indices = @transform_2, window_bounds = array<i64: 2, 2>}, {transform_indices = @transform_3, window_bounds = array<i64: 1, 4, 324>}, {transform_indices = @transform_4, window_bounds = array<i64: 1, 2, 324>}]} {
    %c0 = arith.constant 0 : index
    %c0_0 = arith.constant 0 : index
    %0 = vector.load %arg2[%c0, %c0_0] : memref<2x36xf32, #tpu.memory_space<vmem>>, vector<2x36xf32>
    %c0_1 = arith.constant 0 : index
    %c0_2 = arith.constant 0 : index
    %1 = vector.load %arg3[%c0_1, %c0_2] : memref<2x2xf32, #tpu.memory_space<vmem>>, vector<2x2xf32>
    %cst = arith.constant 0.000000e+00 : f32
    %2 = vector.broadcast %cst : f32 to vector<4x19xf32>
    %c0_3 = arith.constant 0 : index
    %c0_4 = arith.constant 0 : index
    %c0_5 = arith.constant 0 : index
    %3 = vector.load %arg1[%c0_3, %c0_4, %c0_5] : memref<1x4x324xf32, #tpu.memory_space<vmem>>, vector<1x4x324xf32>
    %4 = vector.shape_cast %3 : vector<1x4x324xf32> to vector<4x324xf32>
    %5 = tpu.concatenate %2, %4, %2 in 1 : vector<4x19xf32>, vector<4x324xf32>, vector<4x19xf32> -> vector<4x362xf32>
    %6 = vector.extract_strided_slice %5 {offsets = [0, 0], sizes = [4, 324], strides = [1, 1]} : vector<4x362xf32> to vector<4x324xf32>
    %7 = vector.extract_strided_slice %5 {offsets = [0, 1], sizes = [4, 324], strides = [1, 1]} : vector<4x362xf32> to vector<4x324xf32>
    %8 = vector.extract_strided_slice %5 {offsets = [0, 2], sizes = [4, 324], strides = [1, 1]} : vector<4x362xf32> to vector<4x324xf32>
    %9 = vector.extract_strided_slice %5 {offsets = [0, 18], sizes = [4, 324], strides = [1, 1]} : vector<4x362xf32> to vector<4x324xf32>
    %10 = vector.extract_strided_slice %5 {offsets = [0, 19], sizes = [4, 324], strides = [1, 1]} : vector<4x362xf32> to vector<4x324xf32>
    %11 = vector.extract_strided_slice %5 {offsets = [0, 20], sizes = [4, 324], strides = [1, 1]} : vector<4x362xf32> to vector<4x324xf32>
    %12 = vector.extract_strided_slice %5 {offsets = [0, 36], sizes = [4, 324], strides = [1, 1]} : vector<4x362xf32> to vector<4x324xf32>
    %13 = vector.extract_strided_slice %5 {offsets = [0, 37], sizes = [4, 324], strides = [1, 1]} : vector<4x362xf32> to vector<4x324xf32>
    %14 = vector.extract_strided_slice %5 {offsets = [0, 38], sizes = [4, 324], strides = [1, 1]} : vector<4x362xf32> to vector<4x324xf32>
    %15 = tpu.concatenate %6, %7, %8, %9, %10, %11, %12, %13, %14 in 0 : vector<4x324xf32>, vector<4x324xf32>, vector<4x324xf32>, vector<4x324xf32>, vector<4x324xf32>, vector<4x324xf32>, vector<4x324xf32>, vector<4x324xf32>, vector<4x324xf32> -> vector<36x324xf32>
    %cst_6 = arith.constant dense<0.000000e+00> : vector<2x324xf32>
    %16 = tpu.matmul %0, %15, %cst_6 {dimension_numbers = #tpu.dot_dimension_numbers<[1], [0], [0], [1], [0, 0, 1, 1], [], []>} : vector<2x36xf32>, vector<36x324xf32>, vector<2x324xf32> -> vector<2x324xf32>
    %cst_7 = arith.constant 0.000000e+00 : f32
    %17 = vector.broadcast %cst_7 : f32 to vector<2x324xf32>
    %18 = arith.maximumf %16, %17 : vector<2x324xf32>
    %cst_8 = arith.constant dense<0.000000e+00> : vector<2x324xf32>
    %19 = tpu.matmul %1, %18, %cst_8 {dimension_numbers = #tpu.dot_dimension_numbers<[1], [0], [0], [1], [0, 0, 1, 1], [], []>} : vector<2x2xf32>, vector<2x324xf32>, vector<2x324xf32> -> vector<2x324xf32>
    %c0_9 = arith.constant 0 : index
    %c0_10 = arith.constant 0 : index
    %c0_11 = arith.constant 0 : index
    %20 = vector.load %arg5[%c0_9, %c0_10, %c0_11] : memref<1x2x324xf32, #tpu.memory_space<vmem>>, vector<1x2x324xf32>
    %21 = vector.shape_cast %20 : vector<1x2x324xf32> to vector<2x324xf32>
    %22 = vector.shape_cast %19 : vector<2x324xf32> to vector<1x2x324xf32>
    tpu.vector_store %arg5[%c0_9, %c0_10, %c0_11], %22 {strides = array<i32>} : memref<1x2x324xf32, #tpu.memory_space<vmem>>, vector<1x2x324xf32>,
    %23 = vector.extract_strided_slice %4 {offsets = [0, 0], sizes = [2, 324], strides = [1, 1]} : vector<4x324xf32> to vector<2x324xf32>
    %24 = arith.addf %23, %19 : vector<2x324xf32>
    %25 = math.tanh %24 : vector<2x324xf32>
    %c0_12 = arith.constant 0 : index
    %c0_13 = arith.constant 0 : index
    %c0_14 = arith.constant 0 : index
    %26 = vector.load %arg4[%c0_12, %c0_13, %c0_14] : memref<1x4x324xf32, #tpu.memory_space<vmem>>, vector<1x2x324xf32>
    %27 = vector.shape_cast %26 : vector<1x2x324xf32> to vector<2x324xf32>
    %28 = vector.shape_cast %25 : vector<2x324xf32> to vector<1x2x324xf32>
    tpu.vector_store %arg4[%c0_12, %c0_13, %c0_14], %28 {strides = array<i32>} : memref<1x4x324xf32, #tpu.memory_space<vmem>>, vector<1x2x324xf32>,
    %29 = vector.extract_strided_slice %4 {offsets = [2, 0], sizes = [2, 324], strides = [1, 1]} : vector<4x324xf32> to vector<2x324xf32>
    %30 = math.tanh %29 : vector<2x324xf32>
    %c0_15 = arith.constant 0 : index
    %c2 = arith.constant 2 : index
    %c0_16 = arith.constant 0 : index
    %31 = vector.load %arg4[%c0_15, %c2, %c0_16] : memref<1x4x324xf32, #tpu.memory_space<vmem>>, vector<1x2x324xf32>
    %32 = vector.shape_cast %31 : vector<1x2x324xf32> to vector<2x324xf32>
    %33 = vector.shape_cast %30 : vector<2x324xf32> to vector<1x2x324xf32>
    tpu.vector_store %arg4[%c0_15, %c2, %c0_16], %33 {strides = array<i32>} : memref<1x4x324xf32, #tpu.memory_space<vmem>>, vector<1x2x324xf32>,
    return
  }
  func.func @transform_0(%arg0: i32) -> (i32, i32, i32) {
    %c0_i32 = arith.constant 0 : i32
    %c0_i32_0 = arith.constant 0 : i32
    %c0_i32_1 = arith.constant 0 : i32
    return %arg0, %c0_i32, %c0_i32_0 : i32, i32, i32
  }
  func.func @transform_1(%arg0: i32) -> (i32, i32) {
    %c0_i32 = arith.constant 0 : i32
    %c0_i32_0 = arith.constant 0 : i32
    %c0_i32_1 = arith.constant 0 : i32
    return %c0_i32, %c0_i32_0 : i32, i32
  }
  func.func @transform_2(%arg0: i32) -> (i32, i32) {
    %c0_i32 = arith.constant 0 : i32
    %c0_i32_0 = arith.constant 0 : i32
    %c0_i32_1 = arith.constant 0 : i32
    return %c0_i32, %c0_i32_0 : i32, i32
  }
  func.func @transform_3(%arg0: i32) -> (i32, i32, i32) {
    %c0_i32 = arith.constant 0 : i32
    %c0_i32_0 = arith.constant 0 : i32
    %c0_i32_1 = arith.constant 0 : i32
    return %arg0, %c0_i32, %c0_i32_0 : i32, i32, i32
  }
  func.func @transform_4(%arg0: i32) -> (i32, i32, i32) {
    %c0_i32 = arith.constant 0 : i32
    %c0_i32_0 = arith.constant 0 : i32
    %c0_i32_1 = arith.constant 0 : i32
    return %arg0, %c0_i32, %c0_i32_0 : i32, i32, i32
  }
}

</mosaic_0001>

<bundles_post_ra>
// kernel: flow_block_forward.1
= control target key start
LH: loop header
LB: loop body
LE: loop exit
PB: predicated region body
PF: predicated region fallthrough
CT: control target
= control target key end

     0   :  { %s738_s15 = smov 0   ;;  %s847_s0 = inlined_call_operand.vmem [shape: f32[2,4,324], index: 0, kind: input, shape index: {}]   ;;  %s848_s1 = inlined_call_operand.vmem [shape: f32[2,36], index: 1, kind: input, shape index: {}]   ;;  %s849_s2 = inlined_call_operand.vmem [shape: f32[2,2], index: 2, kind: input, shape index: {}]   ;;  %s850_s3 = inlined_call_operand.vmem [shape: f32[2,4,324], index: 3, kind: output, shape index: {0}]   ;;  %s851_s4 = inlined_call_operand.vmem [shape: f32[2,2,324], index: 4, kind: output, shape index: {1}]  }
   0x1 LB: > { %s612_s16 = sadd.s32 4294967295, %s702_s15   ;;  %p616_p0 = scmp.ge.s32.totalorder %s702_s15, 1  ;;  %s702_s15 = sphi %s738_s15, %s15_s15  }
   0x2   : > { %p165_p1 = scmp.lt.s32.totalorder %s702_s15, 3 }
   0x4   : > { %p166_p2 = pnand %p616_p0, %p165_p1 }
   0x5   : > { %p196_p3 = scmp.lt.s32.totalorder (!%p166_p2), %s612_s16, 1  ;;  %s704_s21 = smov (!%p166_p2), 19  }
   0x6   : > { %169 = sbr.rel (%p166_p2) target bundleno = 576 (0x240), region = 32  ;;  %s705_s22 = smov (!%p166_p2), 90  }
   0x7   : > { %s706_s23 = smov (!%p166_p2), 126   ;;  %s707_s24 = smov (!%p166_p2), 109  }
   0x8   : > { %s708_s25 = smov (!%p166_p2), 92   ;;  %s709_s26 = smov (!%p166_p2), 108  }
   0x9   : > { %s710_s27 = smov (!%p166_p2), 110   ;;  %s711_s28 = smov (!%p166_p2), 91  }
   0xa   : > { %s712_s29 = smov (!%p166_p2), 127  }
   0xb   : > { %s853_s16 = smov (!%p196_p3, %s612_s16), 1  ;;  %vm229_vm0 = vcmask 154624   ;;  %vm236_vm1 = vcmask 711680   ;;  %vm333_vm2 = vcmask 736256   ;;  %vm336_vm3 = vcmask 1043456  }
   0xc   : > { %s634_s17 = smul.u32 12, %s853_s16  ;;  %vm309_vm4 = vcmask 752640   ;;  %vm297_vm5 = vcmask 883712   ;;  %vm285_vm6 = vcmask 891904   ;;  %vm321_vm7 = vcmask 744448  }
   0xd   : > { %vm273_vm8 = vcmask 900096   ;;  %vm261_vm9 = vcmask 1031168   ;;  %vm249_vm10 = vcmask 1039360   ;;  %vm349_vm11 = vcmask 293888   ;;  %s635_s11 = smul.u32 6, %s853_s16 }
   0xe   : > { %s200_s20 = scalar_lea.vmem %s847_s0, %s634_s17  ;;  %vm426_vm12 = vcmask 1041408   ;;  %vm422_vm13 = vcmask 15360   ;;  %s205_s10 = scalar_lea.vmem %s850_s3, %s634_s17  ;;  %vm522_vm14 = vcmask 551938   ;;  %vm504_vm15 = vcmask 1043458  }
   0xf   : > { %v754_v0 = vld [vmem:[%s200_s20] sm:$0xff]  ;;  %v756_v1 = vld [vmem:[%s200_s20 + $0x8] sm:$0xf]  ;;  %s210_s14 = scalar_lea.vmem %s851_s4, %s635_s11 }
  0x10   : > { %217 = vst [vmem:[#allocation1] ss:$2 sm:$0xff] %v754_v0  ;;  %688 = vtanh.f32 %v756_v1 }
  0x11   : > { %219 = vst [vmem:[#allocation1 + $0x10] ss:$2 sm:$0xff] %v756_v1  ;;  %690 = vtanh.f32 %v754_v0 }
  0x17   : > { %v220_v2 = vld.sshfl [vmem:[#allocation1] sm:$0xff pattern:$0x75316420]  ;;  %v221_v4 = vld.sshfl [vmem:[#allocation1 + $0x8] sm:$0xff pattern:$0x75316420] }
  0x18   : > { %223 = vrot.lane.b32.xlu0 %v220_v2, %s704_s21  ;;  %v222_v3 = vld.sshfl [vmem:[#allocation1 + $0x10] sm:$0xff pattern:$0x75316420]  ;;  %v211_v2 = vld [vmem:[%s848_s1] sm:$0x3] }
  0x19   : > { %227 = vrot.lane.b32.xlu1 %v222_v3, %s704_s21 }
  0x20   : > { %225 = vrot.lane.b32.xlu0 %v221_v4, %s704_s21 }
  0x8a   : > { %v224_v5 = vpop.permute.xlu0 %223 }
  0x8b   : > { %v760_v6 = vsel %vm229_vm0, 0.0, %v224_v5  ;;  %v228_v10 = vpop.permute.xlu1 %227 }
  0x8c   : > { %327 = vrot.lane.b32.xlu1 %v760_v6, %s705_s22  ;;  %v240_v14 = vrot.slane %v760_v6, 4 }
  0x92   : > { %v226_v7 = vpop.permute.xlu0 %225 }
  0x93   : > { %v763_v8 = vsel %vm229_vm0, %v224_v5, %v226_v7  ;;  %v231_v11 = vsel %vm229_vm0, %v226_v7, %v228_v10  ;;  %vm505_vm0 = vmor %vm504_vm15, %vm426_vm12 }
  0x94   : > { %329 = vrot.lane.b32.xlu2 %v763_v8, %s705_s22  ;;  %v663_v9 = vpack.i.bf16 %v763_v8, %v760_v6  ;;  %v768_v12 = vsel %vm236_vm1, %v231_v11, 0.0  ;;  %v241_v13 = vrot.slane %v763_v8, 4  ;;  %vm506_vm1 = vcmask 553988  }
  0x95   : > { %v242_v16 = vrot.slane %v768_v12, 4 }
  0x96   : > { %664 = vrot.lane.b32.xlu0 %v663_v9, %s706_s23  ;;  %659 = vrot.lane.b32.xlu1 %v663_v9, %s707_s24  ;;  %v673_v15 = vpack.i.bf16 %v241_v13, %v240_v14 }
  0x9c   : > { %654 = vrot.lane.b32.xlu2 %v663_v9, %s708_s25 }
  0x9e   : > { %331 = vrot.lane.b32.xlu0 %v768_v12, %s705_s22  ;;  %307 = vrot.lane.b32.xlu1 %v768_v12, %s708_s25 }
  0xa4   : > { %674 = vrot.lane.b32.xlu2 %v673_v15, %s709_s26 }
  0xa6   : > { %679 = vrot.lane.b32.xlu1 %v673_v15, %s710_s27  ;;  %669 = vrot.lane.b32.xlu0 %v673_v15, %s711_s28 }
  0xac   : > { %684 = vrot.lane.b32.xlu2 %v673_v15, %s712_s29 }
  0xae   : > { %295 = vrot.lane.b32.xlu1 %v242_v16, %s709_s26  ;;  %283 = vrot.lane.b32.xlu0 %v768_v12, %s707_s24 }
  0xb4   : > { %319 = vrot.lane.b32.xlu2 %v242_v16, %s711_s28 }
  0xb6   : > { %247 = vrot.lane.b32.xlu1 %v242_v16, %s712_s29  ;;  %271 = vrot.lane.b32.xlu0 %v242_v16, %s710_s27 }
  0xbc   : > { %259 = vrot.lane.b32.xlu2 %v768_v12, %s706_s23 }
  0xee   : > { %v330_v17 = vpop.permute.xlu2 %329 }
  0xf6   : > { %v655_v18 = vpop.permute.xlu2 %654 }
  0xf7   : > { %v657_v30 = vunpack.i.h.bf16 %v655_v18  ;;  %v656_v31 = vunpack.i.l.bf16 %v655_v18 }
  0xf9   : > { %v310_v34 = vsel %vm309_vm4, %v656_v31, %v657_v30 }
  0xfe   : > { %v328_v19 = vpop.permute.xlu1 %327  ;;  %v675_v20 = vpop.permute.xlu2 %674 }
  0xff   : > { %v334_v21 = vsel %vm333_vm2, %v328_v19, %v330_v17  ;;  %v677_v35 = vunpack.i.h.bf16 %v675_v20  ;;  %v676_v36 = vunpack.i.l.bf16 %v675_v20  ;;  %v212_v19 = vld [vmem:[%s849_s2] sm:$0x3] }
 0x100   : > { %620 = vmatpush.msk.msra.mxu0 %vm336_vm3, %v334_v21 }
 0x101   : > { %v298_v53 = vsel %vm297_vm5, %v676_v36, %v677_v35 }
 0x106   : > { %v778_v22 = vpop.permute.xlu2 %684 }
 0x107   : > { %v687_v43 = vunpack.i.h.bf16 %v778_v22  ;;  %v686_v44 = vunpack.i.l.bf16 %v778_v22  ;;  %v689_v22 = vpop.eup %688 }
 0x108   : > { %v780_v23 = vpop.permute.xlu0 %664  ;;  %v660_v24 = vpop.permute.xlu1 %659  ;;  %523 = vst.msk [vmem:[%s205_s10 + $0x8] sm:$0xc] %vm522_vm14, %v689_v22 }
 0x109   : > { %v662_v32 = vunpack.i.h.bf16 %v660_v24  ;;  %v661_v33 = vunpack.i.l.bf16 %v660_v24  ;;  %v667_v45 = vunpack.i.h.bf16 %v780_v23  ;;  %v666_v46 = vunpack.i.l.bf16 %v780_v23  ;;  %v691_v23 = vpop.eup %690 }
 0x10a   : > { %v250_v57 = vsel %vm249_vm10, %v686_v44, %v687_v43  ;;  %521 = vst [vmem:[%s205_s10] sm:$0xcc] %v691_v23 }
 0x10b   : > { %v286_v50 = vsel %vm285_vm6, %v661_v33, %v662_v32  ;;  %v262_v56 = vsel %vm261_vm9, %v666_v46, %v667_v45  ;;  %v337_v3 = vsel %vm336_vm3, %v760_v6, %v250_v57 }
 0x10c   : > { %v343_v55 = vsel %vm336_vm3, %v286_v50, %v298_v53 }
 0x10e   : > { %v320_v25 = vpop.permute.xlu2 %319 }
 0x110   : > { %v332_v26 = vpop.permute.xlu0 %331  ;;  %v308_v27 = vpop.permute.xlu1 %307 }
 0x111   : > { %624 = vmatpush.msk.msra.mxu2 %vm336_vm3, %v332_v26  ;;  %v335_v28 = vsel %vm333_vm2, %v330_v17, %v332_v26  ;;  %v348_v29 = vsel %vm336_vm3, %v308_v27, %v320_v25  ;;  %v311_v47 = vsel %vm309_vm4, %v657_v30, %v308_v27  ;;  %vm507_vm2 = vmor %vm506_vm1, %vm505_vm0  ;;  %vm517_vm4 = vcmask 549888  }
 0x112   : > { %622 = vmatpush.msk.msra.mxu1 %vm336_vm3, %v335_v28 }
 0x113   : > { %411 = vmatpush.msra.mxu2 %v348_v29 }
 0x116   : > { %v260_v5 = vpop.permute.xlu2 %259 }
 0x117   : > { %v263_v10 = vsel %vm261_vm9, %v667_v45, %v260_v5 }
 0x118   : > { %v680_v37 = vpop.permute.xlu1 %679  ;;  %v670_v38 = vpop.permute.xlu0 %669 }
 0x119   : > { %v682_v39 = vunpack.i.h.bf16 %v680_v37  ;;  %v681_v40 = vunpack.i.l.bf16 %v680_v37  ;;  %v672_v41 = vunpack.i.h.bf16 %v670_v38  ;;  %v671_v42 = vunpack.i.l.bf16 %v670_v38 }
 0x11b   : > { %v322_v48 = vsel %vm321_vm7, %v671_v42, %v672_v41  ;;  %v323_v49 = vsel %vm321_vm7, %v672_v41, %v320_v25  ;;  %v274_v54 = vsel %vm273_vm8, %v681_v40, %v682_v39 }
 0x11c   : > { %v346_v51 = vsel %vm336_vm3, %v310_v34, %v322_v48  ;;  %v347_v52 = vsel %vm336_vm3, %v311_v47, %v323_v49  ;;  %v340_v60 = vsel %vm336_vm3, %v262_v56, %v274_v54 }
 0x11d   : > { %371 = vmatpush.msra.mxu0 %v346_v51  ;;  %391 = vmatpush.msra.mxu1 %v347_v52 }
 0x11f   : > { %372 = vmatpush.msra.mxu0 %v343_v55 }
 0x120   : > { %v296_v58 = vpop.permute.xlu1 %295  ;;  %v284_v59 = vpop.permute.xlu0 %283 }
 0x121   : > { %v299_v61 = vsel %vm297_vm5, %v677_v35, %v296_v58  ;;  %v287_v62 = vsel %vm285_vm6, %v662_v32, %v284_v59  ;;  %373 = vmatpush.msra.mxu0 %v340_v60  ;;  %v345_v63 = vsel %vm336_vm3, %v284_v59, %v296_v58 }
 0x122   : > { %412 = vmatpush.msra.mxu2 %v345_v63  ;;  %v344_v4 = vsel %vm336_vm3, %v287_v62, %v299_v61 }
 0x123   : > { %374 = vmatpush.msra.mxu0 %v337_v3  ;;  %392 = vmatpush.msra.mxu1 %v344_v4 }
 0x124   : > { %621 = vmatmul.msk.f32.vlgmr.msra.gmra.mxu0 %vm349_vm11, %v211_v2 }
 0x128   : > { %v248_v7 = vpop.permute.xlu1 %247  ;;  %v272_v9 = vpop.permute.xlu0 %271 }
 0x129   : > { %v251_v11 = vsel %vm249_vm10, %v687_v43, %v248_v7  ;;  %v275_v13 = vsel %vm273_vm8, %v682_v39, %v272_v9  ;;  %v342_v14 = vsel %vm336_vm3, %v260_v5, %v272_v9  ;;  %v339_v15 = vsel %vm336_vm3, %v768_v12, %v248_v7 }
 0x12a   : > { %413 = vmatpush.msra.mxu2 %v342_v14  ;;  %v341_v6 = vsel %vm336_vm3, %v263_v10, %v275_v13  ;;  %v338_v16 = vsel %vm336_vm3, %v763_v8, %v251_v11 }
 0x12b   : > { %393 = vmatpush.msra.mxu1 %v341_v6 }
 0x12c   : > { %414 = vmatpush.msra.mxu2 %v339_v15 }
 0x12d   : > { %394 = vmatpush.msra.mxu1 %v338_v16  ;;  %625 = vmatmul.msk.f32.vlgmr.msra.gmra.mxu2 %vm349_vm11, %v211_v2 }
 0x12e   : > { %623 = vmatmul.msk.f32.vlgmr.msra.gmra.mxu1 %vm349_vm11, %v211_v2 }
 0x1a1   : > { %v376_v17 = vpop.f32.mrf.mxu0 }
 0x1a2   : > { %v419_v18 = vmax.f32 %v376_v17, 0.0 }
 0x1a4   : > { %626 = vmatpush.msk.msra.mxu3 %vm426_vm12, %v419_v18 }
 0x1a5   : > { %627 = vmatmul.msk.f32.vlgmr.msra.gmra.mxu3 %vm422_vm13, %v212_v19 }
 0x1ab   : > { %v396_v12 = vpop.f32.mrf.mxu1 }
 0x1ac   : > { %v420_v20 = vmax.f32 %v396_v12, 0.0 }
 0x1ae   : > { %628 = vmatpush.msk.msrb.mxu3 %vm426_vm12, %v420_v20 }
 0x1af   : > { %629 = vmatmul.msk.f32.vlgmr.msrb.gmra.mxu3 %vm422_vm13, %v212_v19 }
 0x1b0   : > { %v416_v8 = vpop.f32.mrf.mxu2 }
 0x1b1   : > { %v421_v21 = vmax.f32 %v416_v8, 0.0 }
 0x1b3   : > { %630 = vmatpush.msk.msrb.mxu0 %vm426_vm12, %v421_v21 }
 0x1b4   : > { %631 = vmatmul.msk.f32.vlgmr.msrb.gmra.mxu0 %vm422_vm13, %v212_v19 }
 0x228   : > { %v453_v24 = vpop.f32.mrf.mxu3 }
 0x231   : > { %v493_v25 = vpop.f32.mrf.mxu0 }
 0x232   : > { %v473_v26 = vpop.f32.mrf.mxu3  ;;  %v500_v27 = vrot.slane %v493_v25, 4  ;;  %v513_v28 = vadd.f32 %v493_v25, %v756_v1 }
 0x233   : > { %v499_v29 = vrot.slane %v473_v26, 6  ;;  %v509_v30 = vrot.slane %v473_v26, 4 }
 0x234   : > { %692 = vtanh.f32 %v513_v28 }
 0x235   : > { %v501_v31 = vsel %vm426_vm12, %v453_v24, %v499_v29  ;;  %v510_v32 = vsel %vm336_vm3, %v453_v24, %v509_v30 }
 0x236   : > { %v512_v33 = vadd.f32 %v510_v32, %v754_v0  ;;  %v502_v34 = vsel %vm336_vm3, %v501_v31, %v500_v27 }
 0x237   : > { %508 = vst.msk [vmem:[%s210_s14] sm:$0x3f] %vm507_vm2, %v502_v34 }
 0x238   : > { %694 = vtanh.f32 %v512_v33 }
 0x23a   : > { %v693_v1 = vpop.eup %692 }
 0x23b   : > { %518 = vst.msk [vmem:[%s205_s10 + $0x8] sm:$0x3] %vm517_vm4, %v693_v1 }
 0x23e   : > { %v695_v35 = vpop.eup %694 }
 0x23f   : > { %516 = vst [vmem:[%s205_s10] sm:$0x33] %v695_v35 }
 0x240 PF: > { %s15_s15 = sadd.s32 1, %s702_s15  }
 0x241   : > { %p12_p4 = scmp.ge.s32.totalorder %s15_s15, 4  }
 0x243   :  { %14 = sbr.rel (!%p12_p4) target bundleno = 1 (0x1), region = 75 }

</bundles_post_ra>
